<compile_context>
chip_gen: v7x
topology: tpu7x:2x2x1
jax: 0.10.0
libtpu: 0.0.40
codegen_flags: <defaults>
</compile_context>

<pallas_src>
import math
import functools
import warnings

import jax
import jax.numpy as jnp
from jax import lax
from jax.experimental import pallas as pl
from jax.experimental.pallas import tpu as pltpu


NEG_INF = -0.7 * float(jnp.finfo(jnp.float32).max)   # finite "masked" score


# ----------------------------- tiling helper -----------------------------

def _pick_tile(n, target, align):
    """Largest multiple of `align` that divides n and is <= target.

    Falls back to the full dim (always a legal block) when n <= target or when no
    aligned divisor exists -- never returns a misaligned / degenerate tile.
    """
    if n <= target:
        return n
    t = (target // align) * align
    while t >= align:
        if n % t == 0:
            return t
        t -= align
    return n


# ----------------------------- linear (matmul) kernel -----------------------------

def _linear_kernel(x_ref, w_ref, o_ref, acc_ref):
    # y = x @ w   (w stored as (in, out) == torch x @ W.T), f32 accumulation on the MXU.
    @pl.when(pl.program_id(2) == 0)
    def _init():
        acc_ref[...] = jnp.zeros_like(acc_ref)

    acc_ref[...] += jnp.dot(x_ref[...], w_ref[...],
                            preferred_element_type=jnp.float32)

    @pl.when(pl.program_id(2) == pl.num_programs(2) - 1)
    def _store():
        o_ref[...] = acc_ref[...].astype(o_ref.dtype)


def linear(x2d, w, *, tm=256, tn=512, tk=1024):
    M, K = x2d.shape
    K2, N = w.shape
    assert K == K2
    tm = _pick_tile(M, tm, 16)     # sublane-aligned (bf16)
    tn = _pick_tile(N, tn, 128)    # lane-aligned
    tk = _pick_tile(K, tk, 128)
    return pl.pallas_call(
        _linear_kernel,
        out_shape=jax.ShapeDtypeStruct((M, N), x2d.dtype),
        grid=(M // tm, N // tn, K // tk),
        in_specs=[
            pl.BlockSpec((tm, tk), lambda i, j, k: (i, k)),
            pl.BlockSpec((tk, tn), lambda i, j, k: (k, j)),
        ],
        out_specs=pl.BlockSpec((tm, tn), lambda i, j, k: (i, j)),
        scratch_shapes=[pltpu.VMEM((tm, tn), jnp.float32)],
        compiler_params=pltpu.CompilerParams(
            dimension_semantics=("parallel", "parallel", "arbitrary")),
    )(x2d, w)


# ----------------------------- attention kernel -----------------------------

def _attn_kernel(lc_ref, qpos_ref, q_ref, k_ref, v_ref, o_ref,
                 m_ref, l_ref, acc_ref, qs_ref, *, scale, kv_tile):
    # lc_ref  : SMEM (n_row_tiles,) int32  -- last KV chunk needed by each row tile
    # qpos_ref: (row_tile, 1) int32        -- query positions of the rows in this tile
    # q_ref   : (row_tile, head_dim)       -- folded GQA rows (rep-major)
    # k/v_ref : (kv_tile, head_dim)
    r = pl.program_id(2)
    c = pl.program_id(3)

    @pl.when(c == 0)
    def _init():
        # q is resident across the kv-chunk axis -> fold 1/sqrt(d) into it exactly once.
        qs_ref[...] = (q_ref[...] * scale).astype(qs_ref.dtype)
        m_ref[...] = jnp.full_like(m_ref, NEG_INF)
        l_ref[...] = jnp.zeros_like(l_ref)
        acc_ref[...] = jnp.zeros_like(acc_ref)

    # Causal chunk skip: chunks entirely beyond this row tile's max query position do
    # zero MXU/EUP work (and their K/V tiles were never DMA'd, see the clamped index_map).
    @pl.when(c <= lc_ref[r])
    def _compute():
        # scores = q @ k^T without an explicit transpose: contract the shared minor dim.
        s = lax.dot_general(qs_ref[...], k_ref[...], (((1,), (1,)), ((), ())),
                            preferred_element_type=jnp.float32)   # (row_tile, kv_tile)

        # Causal mask over the KV cache, generated in-kernel from index arithmetic.
        kv_pos = c * kv_tile + lax.broadcasted_iota(jnp.int32, s.shape, 1)
        s = jnp.where(kv_pos <= qpos_ref[...], s, NEG_INF)

        m_prev = m_ref[...]
        m_new = jnp.maximum(m_prev, jnp.max(s, axis=-1, keepdims=True))
        alpha = jnp.exp(m_prev - m_new)
        p = jnp.exp(s - m_new)                               # f32 softmax numerator
        l_ref[...] = alpha * l_ref[...] + jnp.sum(p, axis=-1, keepdims=True)
        acc_ref[...] = alpha * acc_ref[...] + lax.dot_general(
            p.astype(v_ref.dtype), v_ref[...], (((1,), (0,)), ((), ())),
            preferred_element_type=jnp.float32)
        m_ref[...] = m_new

    @pl.when(c == pl.num_programs(3) - 1)
    def _finalize():
        inv_l = pl.reciprocal(l_ref[...], approx=True)
        o_ref[...] = (acc_ref[...] * inv_l).astype(o_ref.dtype)


# ----------------------------- JAX glue -----------------------------

def apply_rotary_emb(xq, xk, cos, sin):
    """Interleaved (complex-pair) rotary embedding, matching torch.view_as_complex path.

    xq: (b, s, H, d), xk: (b, s, Hkv, d); cos/sin: (s, d//2).  Math in f32, cast back.
    """
    def rot(x):
        xf = x.astype(jnp.float32)
        xe = xf[..., 0::2]
        xo = xf[..., 1::2]
        c = cos[None, :, None, :]
        s = sin[None, :, None, :]
        re = xe * c - xo * s
        im = xe * s + xo * c
        return jnp.stack([re, im], axis=-1).reshape(x.shape).astype(x.dtype)

    return rot(xq), rot(xk)


def attention_forward(params, x, cos, sin, input_indexes, cache_k, cache_v,
                      n_heads, n_kv_heads, *, row_tile_target=256, kv_tile_target=512):
    """cache_k / cache_v are stored head-major: [b, n_kv_heads, cache_len, head_dim]."""
    bsz, seqlen, dim = x.shape
    head_dim = dim // n_heads
    n_rep = n_heads // n_kv_heads
    dtype = x.dtype

    nq = n_heads * head_dim
    nkv = n_kv_heads * head_dim

    # Fused QKV projection: x is streamed from HBM once, one pallas_call.
    x2d = x.reshape(bsz * seqlen, dim)
    qkv = linear(x2d, params["wqkv"])
    xq = qkv[:, :nq].reshape(bsz, seqlen, n_heads, head_dim)
    xk = qkv[:, nq:nq + nkv].reshape(bsz, seqlen, n_kv_heads, head_dim)
    xv = qkv[:, nq + nkv:].reshape(bsz, seqlen, n_kv_heads, head_dim)

    xq, xk = apply_rotary_emb(xq, xk, cos, sin)

    # KV-cache index_copy along the sequence axis; only the new slice is transposed.
    # With cache_k / cache_v donated at the jit boundary this is an in-place scatter.
    cache_k = cache_k.at[:, :, input_indexes, :].set(
        jnp.transpose(xk, (0, 2, 1, 3)).astype(cache_k.dtype))
    cache_v = cache_v.at[:, :, input_indexes, :].set(
        jnp.transpose(xv, (0, 2, 1, 3)).astype(cache_v.dtype))
    cache_len = cache_k.shape[2]

    # Fold the n_rep query heads that share a KV head into one block of rows
    # (row = rep * seqlen + s) so each KV tile is DMA'd once per (kv head, row tile).
    rows = n_rep * seqlen
    q = xq.reshape(bsz, seqlen, n_kv_heads, n_rep, head_dim)
    q = jnp.transpose(q, (0, 2, 3, 1, 4)).reshape(bsz, n_kv_heads, rows, head_dim)

    # Query positions (shared across batch, as in the torch module's index_copy).
    qpos_rows = jnp.tile(input_indexes.astype(jnp.int32), n_rep)      # (rows,) rep-major
    qpos = qpos_rows[:, None]                                         # (rows, 1)

    row_tile = _pick_tile(rows, row_tile_target, 16)
    kv_tile = _pick_tile(cache_len, kv_tile_target, 128)
    n_row_tiles = rows // row_tile
    n_chunks = cache_len // kv_tile
    scale = 1.0 / math.sqrt(head_dim)

    # Last KV chunk each row tile actually needs (causal) -> scalar-prefetched to SMEM,
    # used both for the compute skip and to clamp the K/V DMAs.
    last_chunk = (jnp.max(qpos_rows.reshape(n_row_tiles, row_tile), axis=1)
                  // kv_tile).astype(jnp.int32)

    out = pl.pallas_call(
        functools.partial(_attn_kernel, scale=scale, kv_tile=kv_tile),
        out_shape=jax.ShapeDtypeStruct((bsz, n_kv_heads, rows, head_dim), dtype),
        grid_spec=pltpu.PrefetchScalarGridSpec(
            num_scalar_prefetch=1,
            grid=(bsz, n_kv_heads, n_row_tiles, n_chunks),
            in_specs=[
                pl.BlockSpec((row_tile, 1), lambda b, h, r, c, lc: (r, 0)),
                pl.BlockSpec((None, None, row_tile, head_dim),
                             lambda b, h, r, c, lc: (b, h, r, 0)),
                # GQA: KV cache read once per kv head / row tile, tiled over cache_len;
                # chunk index clamped so fully-masked tiles are never DMA'd.
                pl.BlockSpec((None, None, kv_tile, head_dim),
                             lambda b, h, r, c, lc: (b, h, jnp.minimum(c, lc[r]), 0)),
                pl.BlockSpec((None, None, kv_tile, head_dim),
                             lambda b, h, r, c, lc: (b, h, jnp.minimum(c, lc[r]), 0)),
            ],
            out_specs=pl.BlockSpec((None, None, row_tile, head_dim),
                                   lambda b, h, r, c, lc: (b, h, r, 0)),
            scratch_shapes=[
                pltpu.VMEM((row_tile, 1), jnp.float32),          # running max m
                pltpu.VMEM((row_tile, 1), jnp.float32),          # running denom l
                pltpu.VMEM((row_tile, head_dim), jnp.float32),   # output accumulator
                pltpu.VMEM((row_tile, head_dim), dtype),         # pre-scaled q
            ]),
        compiler_params=pltpu.CompilerParams(
            dimension_semantics=("parallel", "parallel", "parallel", "arbitrary")),
    )(last_chunk, qpos, q, cache_k, cache_v)

    # rows = rep-major -> restore head order h = kv * n_rep + rep (repeat_interleave).
    out = out.reshape(bsz, n_kv_heads, n_rep, seqlen, head_dim)
    out = jnp.transpose(out, (0, 3, 1, 2, 4)).reshape(bsz * seqlen, n_heads * head_dim)
    y = linear(out, params["wo"]).reshape(bsz, seqlen, dim)
    return y, cache_k, cache_v


# ----------------------------- pure-JAX f32 reference -----------------------------

def attention_ref(params, x, cos, sin, mask2d, input_indexes,
                  cache_k, cache_v, n_heads, n_kv_heads):
    """All-f32 reference; cache_k/v in the torch buffer layout (b, cache_len, kvh, d)."""
    bsz, seqlen, dim = x.shape
    head_dim = dim // n_heads
    n_rep = n_heads // n_kv_heads
    xq = (x @ params["wq"]).reshape(bsz, seqlen, n_heads, head_dim)
    xk = (x @ params["wk"]).reshape(bsz, seqlen, n_kv_heads, head_dim)
    xv = (x @ params["wv"]).reshape(bsz, seqlen, n_kv_heads, head_dim)
    xq, xk = apply_rotary_emb(xq, xk, cos, sin)
    cache_k = cache_k.at[:, input_indexes].set(xk)
    cache_v = cache_v.at[:, input_indexes].set(xv)
    keys = jnp.repeat(cache_k, n_rep, axis=2)      # repeat_kv
    values = jnp.repeat(cache_v, n_rep, axis=2)
    q = jnp.transpose(xq, (0, 2, 1, 3))
    k = jnp.transpose(keys, (0, 2, 1, 3))
    v = jnp.transpose(values, (0, 2, 1, 3))
    scores = jnp.einsum("bhqd,bhkd->bhqk", q, k) / math.sqrt(head_dim)
    scores = scores + mask2d[None, None]
    p = jax.nn.softmax(scores.astype(jnp.float32), axis=-1)
    out = jnp.einsum("bhqk,bhkd->bhqd", p, v)
    out = jnp.transpose(out, (0, 2, 1, 3)).reshape(bsz, seqlen, -1)
    return out @ params["wo"]


# ----------------------------- main -----------------------------

if __name__ == "__main__":
    # Small synthetic config consistent with the module:
    # dim=32, n_heads=4, n_kv_heads=2 (n_rep=2), head_dim=8,
    # max_batch_size=bsz=2, max_seq_len=16, seqlen=8.
    dim, n_heads, n_kv_heads = 32, 4, 2
    head_dim = dim // n_heads
    bsz, seqlen, max_seq_len = 2, 8, 16

    key = jax.random.PRNGKey(0)
    k1, k2, k3, k4, k5 = jax.random.split(key, 5)
    init_scale = 0.05
    params = {
        "wq": (jax.random.normal(k1, (dim, n_heads * head_dim), jnp.float32)
               * init_scale).astype(jnp.bfloat16),
        "wk": (jax.random.normal(k2, (dim, n_kv_heads * head_dim), jnp.float32)
               * init_scale).astype(jnp.bfloat16),
        "wv": (jax.random.normal(k3, (dim, n_kv_heads * head_dim), jnp.float32)
               * init_scale).astype(jnp.bfloat16),
        "wo": (jax.random.normal(k4, (n_heads * head_dim, dim), jnp.float32)
               * init_scale).astype(jnp.bfloat16),
    }
    # One-time weight fusion for the QKV projection (done at load/prep time, not per step).
    params["wqkv"] = jnp.concatenate([params["wq"], params["wk"], params["wv"]], axis=1)

    x = jax.random.normal(k5, (bsz, seqlen, dim), jnp.float32).astype(jnp.bfloat16)
    input_indexes = jnp.arange(seqlen, dtype=jnp.int32)

    # rotary frequencies (LLaMA convention), stored as cos/sin of shape (seqlen, head_dim//2)
    inv_freq = 1.0 / (10000.0 ** (jnp.arange(0, head_dim, 2, dtype=jnp.float32) / head_dim))
    freqs = input_indexes.astype(jnp.float32)[:, None] * inv_freq[None, :]
    cos, sin = jnp.cos(freqs), jnp.sin(freqs)

    # head-major KV cache used by the Pallas path
    cache_k = jnp.zeros((bsz, n_kv_heads, max_seq_len, head_dim), jnp.bfloat16)
    cache_v = jnp.zeros_like(cache_k)

    # Donate the caches so the index_copy lowers to an in-place update.
    warnings.filterwarnings("ignore", message=".*[Dd]onat")
    attn_jit = jax.jit(attention_forward, static_argnums=(7, 8), donate_argnums=(5, 6))

    y, new_ck, new_cv = attn_jit(params, x, cos, sin, input_indexes,
                                 cache_k, cache_v, n_heads, n_kv_heads)
    y = jax.block_until_ready(y)

    # f32 reference on the same (bf16-rounded) values, with the explicit additive causal
    # mask over the full cache (which also masks unwritten cache slots).
    params_f32 = {kk: vv.astype(jnp.float32) for kk, vv in params.items()}
    x_f32 = x.astype(jnp.float32)
    cache_pos = jnp.arange(max_seq_len)
    mask2d = jnp.where(cache_pos[None, :] <= input_indexes[:, None],
                       0.0, -1e9).astype(jnp.float32)
    ck_ref = jnp.zeros((bsz, max_seq_len, n_kv_heads, head_dim), jnp.float32)
    cv_ref = jnp.zeros_like(ck_ref)
    y_ref = attention_ref(params_f32, x_f32, cos, sin, mask2d, input_indexes,
                          ck_ref, cv_ref, n_heads, n_kv_heads)

    assert y.shape == (bsz, seqlen, dim)
    err = float(jnp.max(jnp.abs(y.astype(jnp.float32) - y_ref)))
    assert err < 3e-2, f"mismatch vs pure-JAX reference: max abs err {err}"

    print("KERNEL_OK")
</pallas_src>

<mosaic_0001>
module attributes {stable_mosaic.version = 11 : i64} {
  func.func @_linear_kernel(%arg0: i32, %arg1: i32, %arg2: i32, %arg3: memref<16x32xbf16, #tpu.memory_space<vmem>>, %arg4: memref<32x64xbf16, #tpu.memory_space<vmem>>, %arg5: memref<16x64xbf16, #tpu.memory_space<vmem>>, %arg6: memref<16x64xf32, #tpu.memory_space<vmem>>) attributes {dimension_semantics = [#tpu.dimension_semantics<parallel>, #tpu.dimension_semantics<parallel>, #tpu.dimension_semantics<arbitrary>], iteration_bounds = array<i64: 1, 1, 1>, scalar_prefetch = 0 : i64, scratch_operands = 1 : i64, tpu.core_type = #tpu.core_type<tc>, window_params = [{transform_indices = @transform_0, window_bounds = array<i64: 16, 32>}, {transform_indices = @transform_1, window_bounds = array<i64: 32, 64>}, {transform_indices = @transform_2, window_bounds = array<i64: 16, 64>}]} {
    %c0_i32 = arith.constant 0 : i32
    %0 = arith.cmpi eq, %arg2, %c0_i32 : i32
    %1 = arith.extui %0 : i1 to i32
    %c0_i32_0 = arith.constant 0 : i32
    %2 = arith.cmpi ne, %1, %c0_i32_0 : i32
    scf.if %2 {
      %cst_10 = arith.constant 0.000000e+00 : f32
      %12 = vector.broadcast %cst_10 : f32 to vector<16x64xf32>
      %c0_11 = arith.constant 0 : index
      %c0_12 = arith.constant 0 : index
      %13 = vector.load %arg6[%c0_11, %c0_12] : memref<16x64xf32, #tpu.memory_space<vmem>>, vector<16x64xf32>
      tpu.vector_store %arg6[%c0_11, %c0_12], %12 {strides = array<i32>} : memref<16x64xf32, #tpu.memory_space<vmem>>, vector<16x64xf32>,
    } else {
    }
    %c0 = arith.constant 0 : index
    %c0_1 = arith.constant 0 : index
    %3 = vector.load %arg6[%c0, %c0_1] : memref<16x64xf32, #tpu.memory_space<vmem>>, vector<16x64xf32>
    %c0_2 = arith.constant 0 : index
    %c0_3 = arith.constant 0 : index
    %4 = vector.load %arg3[%c0_2, %c0_3] : memref<16x32xbf16, #tpu.memory_space<vmem>>, vector<16x32xbf16>
    %c0_4 = arith.constant 0 : index
    %c0_5 = arith.constant 0 : index
    %5 = vector.load %arg4[%c0_4, %c0_5] : memref<32x64xbf16, #tpu.memory_space<vmem>>, vector<32x64xbf16>
    %cst = arith.constant dense<0.000000e+00> : vector<16x64xf32>
    %6 = tpu.matmul %4, %5, %cst {dimension_numbers = #tpu.dot_dimension_numbers<[1], [0], [0], [1], [0, 0, 1, 1], [], []>} : vector<16x32xbf16>, vector<32x64xbf16>, vector<16x64xf32> -> vector<16x64xf32>
    %7 = arith.addf %3, %6 : vector<16x64xf32>
    %c0_6 = arith.constant 0 : index
    %c0_7 = arith.constant 0 : index
    %8 = vector.load %arg6[%c0_6, %c0_7] : memref<16x64xf32, #tpu.memory_space<vmem>>, vector<16x64xf32>
    tpu.vector_store %arg6[%c0_6, %c0_7], %7 {strides = array<i32>} : memref<16x64xf32, #tpu.memory_space<vmem>>, vector<16x64xf32>,
    %c0_i32_8 = arith.constant 0 : i32
    %9 = arith.cmpi eq, %arg2, %c0_i32_8 : i32
    %10 = arith.extui %9 : i1 to i32
    %c0_i32_9 = arith.constant 0 : i32
    %11 = arith.cmpi ne, %10, %c0_i32_9 : i32
    scf.if %11 {
      %c0_10 = arith.constant 0 : index
      %c0_11 = arith.constant 0 : index
      %12 = vector.load %arg6[%c0_10, %c0_11] : memref<16x64xf32, #tpu.memory_space<vmem>>, vector<16x64xf32>
      %13 = arith.truncf %12 : vector<16x64xf32> to vector<16x64xbf16>
      %c0_12 = arith.constant 0 : index
      %c0_13 = arith.constant 0 : index
      %14 = vector.load %arg5[%c0_12, %c0_13] : memref<16x64xbf16, #tpu.memory_space<vmem>>, vector<16x64xbf16>
      tpu.vector_store %arg5[%c0_12, %c0_13], %13 {strides = array<i32>} : memref<16x64xbf16, #tpu.memory_space<vmem>>, vector<16x64xbf16>,
    } else {
    }
    return
  }
  func.func @transform_0(%arg0: i32, %arg1: i32, %arg2: i32) -> (i32, i32) {
    %c0_i32 = arith.constant 0 : i32
    return %arg0, %arg2 : i32, i32
  }
  func.func @transform_1(%arg0: i32, %arg1: i32, %arg2: i32) -> (i32, i32) {
    %c0_i32 = arith.constant 0 : i32
    return %arg2, %arg1 : i32, i32
  }
  func.func @transform_2(%arg0: i32, %arg1: i32, %arg2: i32) -> (i32, i32) {
    %c0_i32 = arith.constant 0 : i32
    return %arg0, %arg1 : i32, i32
  }
}

module attributes {stable_mosaic.version = 11 : i64} {
  func.func @_attn_kernel(%arg0: i32, %arg1: i32, %arg2: i32, %arg3: i32, %arg4: memref<1xi32, #tpu.memory_space<smem>>, %arg5: memref<16x1xi32, #tpu.memory_space<vmem>>, %arg6: memref<1x1x16x8xbf16, #tpu.memory_space<vmem>>, %arg7: memref<1x1x16x8xbf16, #tpu.memory_space<vmem>>, %arg8: memref<1x1x16x8xbf16, #tpu.memory_space<vmem>>, %arg9: memref<1x1x16x8xbf16, #tpu.memory_space<vmem>>, %arg10: memref<16x1xf32, #tpu.memory_space<vmem>>, %arg11: memref<16x1xf32, #tpu.memory_space<vmem>>, %arg12: memref<16x8xf32, #tpu.memory_space<vmem>>, %arg13: memref<16x8xbf16, #tpu.memory_space<vmem>>) attributes {dimension_semantics = [#tpu.dimension_semantics<parallel>, #tpu.dimension_semantics<parallel>, #tpu.dimension_semantics<parallel>, #tpu.dimension_semantics<arbitrary>], iteration_bounds = array<i64: 2, 2, 1, 1>, scalar_prefetch = 1 : i64, scratch_operands = 4 : i64, tpu.core_type = #tpu.core_type<tc>, window_params = [{transform_indices = @transform_0, window_bounds = array<i64: 16, 1>}, {transform_indices = @transform_1, window_bounds = array<i64: 1, 1, 16, 8>}, {transform_indices = @transform_2, window_bounds = array<i64: 1, 1, 16, 8>}, {transform_indices = @transform_3, window_bounds = array<i64: 1, 1, 16, 8>}, {transform_indices = @transform_4, window_bounds = array<i64: 1, 1, 16, 8>}]} {
    %c0_i32 = arith.constant 0 : i32
    %0 = arith.cmpi eq, %arg3, %c0_i32 : i32
    %1 = arith.extui %0 : i1 to i32
    %c0_i32_0 = arith.constant 0 : i32
    %2 = arith.cmpi ne, %1, %c0_i32_0 : i32
    scf.if %2 {
      %c0 = arith.constant 0 : index
      %c0_4 = arith.constant 0 : index
      %c0_5 = arith.constant 0 : index
      %c0_6 = arith.constant 0 : index
      %11 = vector.load %arg6[%c0, %c0_4, %c0_5, %c0_6] : memref<1x1x16x8xbf16, #tpu.memory_space<vmem>>, vector<1x1x16x8xbf16>
      %12 = vector.shape_cast %11 : vector<1x1x16x8xbf16> to vector<16x8xbf16>
      %cst = arith.constant 3.535160e-01 : bf16
      %13 = vector.broadcast %cst : bf16 to vector<16x8xbf16>
      %14 = arith.mulf %12, %13 : vector<16x8xbf16>
      %c0_7 = arith.constant 0 : index
      %c0_8 = arith.constant 0 : index
      %15 = vector.load %arg13[%c0_7, %c0_8] : memref<16x8xbf16, #tpu.memory_space<vmem>>, vector<16x8xbf16>
      tpu.vector_store %arg13[%c0_7, %c0_8], %14 {strides = array<i32>} : memref<16x8xbf16, #tpu.memory_space<vmem>>, vector<16x8xbf16>,
      %cst_9 = arith.constant -2.38197633E+38 : f32
      %16 = vector.broadcast %cst_9 : f32 to vector<16x1xf32>
      %c0_10 = arith.constant 0 : index
      %c0_11 = arith.constant 0 : index
      %17 = vector.load %arg10[%c0_10, %c0_11] : memref<16x1xf32, #tpu.memory_space<vmem>>, vector<16x1xf32>
      tpu.vector_store %arg10[%c0_10, %c0_11], %16 {strides = array<i32>} : memref<16x1xf32, #tpu.memory_space<vmem>>, vector<16x1xf32>,
      %cst_12 = arith.constant 0.000000e+00 : f32
      %18 = vector.broadcast %cst_12 : f32 to vector<16x1xf32>
      %c0_13 = arith.constant 0 : index
      %c0_14 = arith.constant 0 : index
      %19 = vector.load %arg11[%c0_13, %c0_14] : memref<16x1xf32, #tpu.memory_space<vmem>>, vector<16x1xf32>
      tpu.vector_store %arg11[%c0_13, %c0_14], %18 {strides = array<i32>} : memref<16x1xf32, #tpu.memory_space<vmem>>, vector<16x1xf32>,
      %cst_15 = arith.constant 0.000000e+00 : f32
      %20 = vector.broadcast %cst_15 : f32 to vector<16x8xf32>
      %c0_16 = arith.constant 0 : index
      %c0_17 = arith.constant 0 : index
      %21 = vector.load %arg12[%c0_16, %c0_17] : memref<16x8xf32, #tpu.memory_space<vmem>>, vector<16x8xf32>
      tpu.vector_store %arg12[%c0_16, %c0_17], %20 {strides = array<i32>} : memref<16x8xf32, #tpu.memory_space<vmem>>, vector<16x8xf32>,
    } else {
    }
    %3 = arith.index_cast %arg2 : i32 to index
    %4 = memref.load %arg4[%3] : memref<1xi32, #tpu.memory_space<smem>>
    %5 = arith.cmpi sle, %arg3, %4 : i32
    %6 = arith.extui %5 : i1 to i32
    %c0_i32_1 = arith.constant 0 : i32
    %7 = arith.cmpi ne, %6, %c0_i32_1 : i32
    scf.if %7 {
      %c0 = arith.constant 0 : index
      %c0_4 = arith.constant 0 : index
      %11 = vector.load %arg13[%c0, %c0_4] : memref<16x8xbf16, #tpu.memory_space<vmem>>, vector<16x8xbf16>
      %c0_5 = arith.constant 0 : index
      %c0_6 = arith.constant 0 : index
      %c0_7 = arith.constant 0 : index
      %c0_8 = arith.constant 0 : index
      %12 = vector.load %arg7[%c0_5, %c0_6, %c0_7, %c0_8] : memref<1x1x16x8xbf16, #tpu.memory_space<vmem>>, vector<1x1x16x8xbf16>
      %13 = vector.shape_cast %12 : vector<1x1x16x8xbf16> to vector<16x8xbf16>
      %cst = arith.constant dense<0.000000e+00> : vector<16x16xf32>
      %14 = tpu.matmul %11, %13, %cst {dimension_numbers = #tpu.dot_dimension_numbers<[1], [1], [0], [0], [0, 0, 1, 0], [], []>} : vector<16x8xbf16>, vector<16x8xbf16>, vector<16x16xf32> -> vector<16x16xf32>
      %c16_i32 = arith.constant 16 : i32
      %15 = arith.muli %arg3, %c16_i32 : i32
      %16 = tpu.iota {dimensions = array<i32: 1>} : vector<16x16xi32>
      %17 = vector.broadcast %15 : i32 to vector<16x16xi32>
      %18 = arith.addi %17, %16 : vector<16x16xi32>
      %c0_9 = arith.constant 0 : index
      %c0_10 = arith.constant 0 : index
      %19 = vector.load %arg5[%c0_9, %c0_10] : memref<16x1xi32, #tpu.memory_space<vmem>>, vector<16x1xi32>
      %20 = vector.broadcast %19 : vector<16x1xi32> to vector<16x16xi32>
      %21 = arith.cmpi sle, %18, %20 : vector<16x16xi32>
      %cst_11 = arith.constant -2.38197633E+38 : f32
      %22 = vector.broadcast %cst_11 : f32 to vector<16x16xf32>
      %23 = arith.select %21, %14, %22 : vector<16x16xi1>, vector<16x16xf32>
      %c0_12 = arith.constant 0 : index
      %c0_13 = arith.constant 0 : index
      %24 = vector.load %arg10[%c0_12, %c0_13] : memref<16x1xf32, #tpu.memory_space<vmem>>, vector<16x1xf32>
      %cst_14 = arith.constant dense<0xFF800000> : vector<16xf32>
      %25 = vector.multi_reduction <maximumf>, %23, %cst_14 [1] : vector<16x16xf32> to vector<16xf32>
      %26 = vector.shape_cast %25 : vector<16xf32> to vector<16x1xf32>
      %27 = arith.maximumf %24, %26 : vector<16x1xf32>
      %28 = arith.subf %24, %27 : vector<16x1xf32>
      %29 = math.exp %28 : vector<16x1xf32>
      %30 = vector.broadcast %27 : vector<16x1xf32> to vector<16x16xf32>
      %31 = arith.subf %23, %30 : vector<16x16xf32>
      %32 = math.exp %31 : vector<16x16xf32>
      %c0_15 = arith.constant 0 : index
      %c0_16 = arith.constant 0 : index
      %33 = vector.load %arg11[%c0_15, %c0_16] : memref<16x1xf32, #tpu.memory_space<vmem>>, vector<16x1xf32>
      %34 = arith.mulf %29, %33 : vector<16x1xf32>
      %cst_17 = arith.constant dense<0.000000e+00> : vector<16xf32>
      %35 = vector.multi_reduction <add>, %32, %cst_17 [1] : vector<16x16xf32> to vector<16xf32>
      %36 = vector.shape_cast %35 : vector<16xf32> to vector<16x1xf32>
      %37 = arith.addf %34, %36 : vector<16x1xf32>
      %c0_18 = arith.constant 0 : index
      %c0_19 = arith.constant 0 : index
      %38 = vector.load %arg11[%c0_18, %c0_19] : memref<16x1xf32, #tpu.memory_space<vmem>>, vector<16x1xf32>
      tpu.vector_store %arg11[%c0_18, %c0_19], %37 {strides = array<i32>} : memref<16x1xf32, #tpu.memory_space<vmem>>, vector<16x1xf32>,
      %c0_20 = arith.constant 0 : index
      %c0_21 = arith.constant 0 : index
      %39 = vector.load %arg12[%c0_20, %c0_21] : memref<16x8xf32, #tpu.memory_space<vmem>>, vector<16x8xf32>
      %40 = vector.broadcast %29 : vector<16x1xf32> to vector<16x8xf32>
      %41 = arith.mulf %40, %39 : vector<16x8xf32>
      %42 = arith.truncf %32 : vector<16x16xf32> to vector<16x16xbf16>
      %c0_22 = arith.constant 0 : index
      %c0_23 = arith.constant 0 : index
      %c0_24 = arith.constant 0 : index
      %c0_25 = arith.constant 0 : index
      %43 = vector.load %arg8[%c0_22, %c0_23, %c0_24, %c0_25] : memref<1x1x16x8xbf16, #tpu.memory_space<vmem>>, vector<1x1x16x8xbf16>
      %44 = vector.shape_cast %43 : vector<1x1x16x8xbf16> to vector<16x8xbf16>
      %cst_26 = arith.constant dense<0.000000e+00> : vector<16x8xf32>
      %45 = tpu.matmul %42, %44, %cst_26 {dimension_numbers = #tpu.dot_dimension_numbers<[1], [0], [0], [1], [0, 0, 1, 1], [], []>} : vector<16x16xbf16>, vector<16x8xbf16>, vector<16x8xf32> -> vector<16x8xf32>
      %46 = arith.addf %41, %45 : vector<16x8xf32>
      %c0_27 = arith.constant 0 : index
      %c0_28 = arith.constant 0 : index
      %47 = vector.load %arg12[%c0_27, %c0_28] : memref<16x8xf32, #tpu.memory_space<vmem>>, vector<16x8xf32>
      tpu.vector_store %arg12[%c0_27, %c0_28], %46 {strides = array<i32>} : memref<16x8xf32, #tpu.memory_space<vmem>>, vector<16x8xf32>,
      %c0_29 = arith.constant 0 : index
      %c0_30 = arith.constant 0 : index
      %48 = vector.load %arg10[%c0_29, %c0_30] : memref<16x1xf32, #tpu.memory_space<vmem>>, vector<16x1xf32>
      tpu.vector_store %arg10[%c0_29, %c0_30], %27 {strides = array<i32>} : memref<16x1xf32, #tpu.memory_space<vmem>>, vector<16x1xf32>,
    } else {
    }
    %c0_i32_2 = arith.constant 0 : i32
    %8 = arith.cmpi eq, %arg3, %c0_i32_2 : i32
    %9 = arith.extui %8 : i1 to i32
    %c0_i32_3 = arith.constant 0 : i32
    %10 = arith.cmpi ne, %9, %c0_i32_3 : i32
    scf.if %10 {
      %c0 = arith.constant 0 : index
      %c0_4 = arith.constant 0 : index
      %11 = vector.load %arg11[%c0, %c0_4] : memref<16x1xf32, #tpu.memory_space<vmem>>, vector<16x1xf32>
      %12 = tpu.reciprocal %11 {approx = true} : vector<16x1xf32> -> vector<16x1xf32>
      %c0_5 = arith.constant 0 : index
      %c0_6 = arith.constant 0 : index
      %13 = vector.load %arg12[%c0_5, %c0_6] : memref<16x8xf32, #tpu.memory_space<vmem>>, vector<16x8xf32>
      %14 = vector.broadcast %12 : vector<16x1xf32> to vector<16x8xf32>
      %15 = arith.mulf %13, %14 : vector<16x8xf32>
      %16 = arith.truncf %15 : vector<16x8xf32> to vector<16x8xbf16>
      %c0_7 = arith.constant 0 : index
      %c0_8 = arith.constant 0 : index
      %c0_9 = arith.constant 0 : index
      %c0_10 = arith.constant 0 : index
      %17 = vector.load %arg9[%c0_7, %c0_8, %c0_9, %c0_10] : memref<1x1x16x8xbf16, #tpu.memory_space<vmem>>, vector<1x1x16x8xbf16>
      %18 = vector.shape_cast %17 : vector<1x1x16x8xbf16> to vector<16x8xbf16>
      %19 = vector.shape_cast %16 : vector<16x8xbf16> to vector<1x1x16x8xbf16>
      tpu.vector_store %arg9[%c0_7, %c0_8, %c0_9, %c0_10], %19 {strides = array<i32>} : memref<1x1x16x8xbf16, #tpu.memory_space<vmem>>, vector<1x1x16x8xbf16>,
    } else {
    }
    return
  }
  func.func @transform_0(%arg0: i32, %arg1: i32, %arg2: i32, %arg3: i32, %arg4: memref<1xi32, #tpu.memory_space<smem>>) -> (i32, i32) {
    %c0_i32 = arith.constant 0 : i32
    %c0_i32_0 = arith.constant 0 : i32
    return %arg2, %c0_i32 : i32, i32
  }
  func.func @transform_1(%arg0: i32, %arg1: i32, %arg2: i32, %arg3: i32, %arg4: memref<1xi32, #tpu.memory_space<smem>>) -> (i32, i32, i32, i32) {
    %c0_i32 = arith.constant 0 : i32
    %c0_i32_0 = arith.constant 0 : i32
    return %arg0, %arg1, %arg2, %c0_i32 : i32, i32, i32, i32
  }
  func.func @transform_2(%arg0: i32, %arg1: i32, %arg2: i32, %arg3: i32, %arg4: memref<1xi32, #tpu.memory_space<smem>>) -> (i32, i32, i32, i32) {
    %0 = arith.index_cast %arg2 : i32 to index
    %1 = memref.load %arg4[%0] : memref<1xi32, #tpu.memory_space<smem>>
    %2 = arith.minsi %arg3, %1 : i32
    %c0_i32 = arith.constant 0 : i32
    %c0_i32_0 = arith.constant 0 : i32
    return %arg0, %arg1, %2, %c0_i32 : i32, i32, i32, i32
  }
  func.func @transform_3(%arg0: i32, %arg1: i32, %arg2: i32, %arg3: i32, %arg4: memref<1xi32, #tpu.memory_space<smem>>) -> (i32, i32, i32, i32) {
    %0 = arith.index_cast %arg2 : i32 to index
    %1 = memref.load %arg4[%0] : memref<1xi32, #tpu.memory_space<smem>>
    %2 = arith.minsi %arg3, %1 : i32
    %c0_i32 = arith.constant 0 : i32
    %c0_i32_0 = arith.constant 0 : i32
    return %arg0, %arg1, %2, %c0_i32 : i32, i32, i32, i32
  }
  func.func @transform_4(%arg0: i32, %arg1: i32, %arg2: i32, %arg3: i32, %arg4: memref<1xi32, #tpu.memory_space<smem>>) -> (i32, i32, i32, i32) {
    %c0_i32 = arith.constant 0 : i32
    %c0_i32_0 = arith.constant 0 : i32
    return %arg0, %arg1, %arg2, %c0_i32 : i32, i32, i32, i32
  }
}

module attributes {stable_mosaic.version = 11 : i64} {
  func.func @_linear_kernel(%arg0: i32, %arg1: i32, %arg2: i32, %arg3: memref<16x32xbf16, #tpu.memory_space<vmem>>, %arg4: memref<32x32xbf16, #tpu.memory_space<vmem>>, %arg5: memref<16x32xbf16, #tpu.memory_space<vmem>>, %arg6: memref<16x32xf32, #tpu.memory_space<vmem>>) attributes {dimension_semantics = [#tpu.dimension_semantics<parallel>, #tpu.dimension_semantics<parallel>, #tpu.dimension_semantics<arbitrary>], iteration_bounds = array<i64: 1, 1, 1>, scalar_prefetch = 0 : i64, scratch_operands = 1 : i64, tpu.core_type = #tpu.core_type<tc>, window_params = [{transform_indices = @transform_0, window_bounds = array<i64: 16, 32>}, {transform_indices = @transform_1, window_bounds = array<i64: 32, 32>}, {transform_indices = @transform_2, window_bounds = array<i64: 16, 32>}]} {
    %c0_i32 = arith.constant 0 : i32
    %0 = arith.cmpi eq, %arg2, %c0_i32 : i32
    %1 = arith.extui %0 : i1 to i32
    %c0_i32_0 = arith.constant 0 : i32
    %2 = arith.cmpi ne, %1, %c0_i32_0 : i32
    scf.if %2 {
      %cst_10 = arith.constant 0.000000e+00 : f32
      %12 = vector.broadcast %cst_10 : f32 to vector<16x32xf32>
      %c0_11 = arith.constant 0 : index
      %c0_12 = arith.constant 0 : index
      %13 = vector.load %arg6[%c0_11, %c0_12] : memref<16x32xf32, #tpu.memory_space<vmem>>, vector<16x32xf32>
      tpu.vector_store %arg6[%c0_11, %c0_12], %12 {strides = array<i32>} : memref<16x32xf32, #tpu.memory_space<vmem>>, vector<16x32xf32>,
    } else {
    }
    %c0 = arith.constant 0 : index
    %c0_1 = arith.constant 0 : index
    %3 = vector.load %arg6[%c0, %c0_1] : memref<16x32xf32, #tpu.memory_space<vmem>>, vector<16x32xf32>
    %c0_2 = arith.constant 0 : index
    %c0_3 = arith.constant 0 : index
    %4 = vector.load %arg3[%c0_2, %c0_3] : memref<16x32xbf16, #tpu.memory_space<vmem>>, vector<16x32xbf16>
    %c0_4 = arith.constant 0 : index
    %c0_5 = arith.constant 0 : index
    %5 = vector.load %arg4[%c0_4, %c0_5] : memref<32x32xbf16, #tpu.memory_space<vmem>>, vector<32x32xbf16>
    %cst = arith.constant dense<0.000000e+00> : vector<16x32xf32>
    %6 = tpu.matmul %4, %5, %cst {dimension_numbers = #tpu.dot_dimension_numbers<[1], [0], [0], [1], [0, 0, 1, 1], [], []>} : vector<16x32xbf16>, vector<32x32xbf16>, vector<16x32xf32> -> vector<16x32xf32>
    %7 = arith.addf %3, %6 : vector<16x32xf32>
    %c0_6 = arith.constant 0 : index
    %c0_7 = arith.constant 0 : index
    %8 = vector.load %arg6[%c0_6, %c0_7] : memref<16x32xf32, #tpu.memory_space<vmem>>, vector<16x32xf32>
    tpu.vector_store %arg6[%c0_6, %c0_7], %7 {strides = array<i32>} : memref<16x32xf32, #tpu.memory_space<vmem>>, vector<16x32xf32>,
    %c0_i32_8 = arith.constant 0 : i32
    %9 = arith.cmpi eq, %arg2, %c0_i32_8 : i32
    %10 = arith.extui %9 : i1 to i32
    %c0_i32_9 = arith.constant 0 : i32
    %11 = arith.cmpi ne, %10, %c0_i32_9 : i32
    scf.if %11 {
      %c0_10 = arith.constant 0 : index
      %c0_11 = arith.constant 0 : index
      %12 = vector.load %arg6[%c0_10, %c0_11] : memref<16x32xf32, #tpu.memory_space<vmem>>, vector<16x32xf32>
      %13 = arith.truncf %12 : vector<16x32xf32> to vector<16x32xbf16>
      %c0_12 = arith.constant 0 : index
      %c0_13 = arith.constant 0 : index
      %14 = vector.load %arg5[%c0_12, %c0_13] : memref<16x32xbf16, #tpu.memory_space<vmem>>, vector<16x32xbf16>
      tpu.vector_store %arg5[%c0_12, %c0_13], %13 {strides = array<i32>} : memref<16x32xbf16, #tpu.memory_space<vmem>>, vector<16x32xbf16>,
    } else {
    }
    return
  }
  func.func @transform_0(%arg0: i32, %arg1: i32, %arg2: i32) -> (i32, i32) {
    %c0_i32 = arith.constant 0 : i32
    return %arg0, %arg2 : i32, i32
  }
  func.func @transform_1(%arg0: i32, %arg1: i32, %arg2: i32) -> (i32, i32) {
    %c0_i32 = arith.constant 0 : i32
    return %arg2, %arg1 : i32, i32
  }
  func.func @transform_2(%arg0: i32, %arg1: i32, %arg2: i32) -> (i32, i32) {
    %c0_i32 = arith.constant 0 : i32
    return %arg0, %arg1 : i32, i32
  }
}

</mosaic_0001>

<bundles_post_ra>
// kernel: tile.9
= control target key start
LH: loop header
LB: loop body
LE: loop exit
PB: predicated region body
PF: predicated region fallthrough
CT: control target
= control target key end

     0   :  { %s22_s0 = inlined_call_operand.vmem [shape: s32[8], index: 0, kind: input, shape index: {}]   ;;  %s23_s1 = inlined_call_operand.vmem [shape: s32[2,8], index: 1, kind: output, shape index: {}]  }
   0x1   :  { %v4_v0 = vld [vmem:[%s22_s0] ss:$0 sm:$0xff] }
   0x2   :  { %5 = vst [vmem:[%s23_s1] sm:$0x3] %v4_v0 }

// kernel: tile.0
= control target key start
LH: loop header
LB: loop body
LE: loop exit
PB: predicated region body
PF: predicated region fallthrough
CT: control target
= control target key end

     0   :  { %s66_s8 = smov 125   ;;  %vm7_vm0 = vcmask 7168   ;;  %s67_s11 = smov 126   ;;  %s117_s0 = inlined_call_operand.vmem [shape: s32[2,8], index: 0, kind: input, shape index: {}]   ;;  %s118_s1 = inlined_call_operand.vmem [shape: s32[16,1], index: 1, kind: output, shape index: {}]  }
   0x1   :  { %v4_v0 = vld [vmem:[%s117_s0] sm:$0x3]  ;;  %s65_s0 = smov 127   ;;  %s68_s12 = smov 124  }
   0x2   :  { %5 = vst [vmem:[#allocation0] sm:$0x3] %v4_v0  ;;  %s69_s13 = smov 123   ;;  %s70_s14 = smov 122  }
   0x3   :  { %s71_s15 = smov 121  }
   0x9   :  { %v9_v1 = vld [vmem:[#allocation0] sm:$0x3]  }
   0xa   :  { %v21_v2 = vld [vmem:[#allocation0] sm:$0x3]   ;;  %10 = vrot.lane.b32.xlu0 %v9_v1, %s65_s0 }
   0xb   :  { %22 = vrot.lane.b32.xlu1 %v21_v2, %s66_s8  ;;  %v15_v3 = vld [vmem:[#allocation0] sm:$0x3]  }
   0xc   :  { %v27_v4 = vld [vmem:[#allocation0] sm:$0x3]  }
   0xd   :  { %v6_v5 = vld [vmem:[#allocation0] sm:$0x3]  }
   0xe   :  { %8 = vst.msk [vmem:[%s118_s1] ss:$8 sm:$0x3] %vm7_vm0, %v6_v5   ;;  %16 = vrot.lane.b32.xlu0 %v15_v3, %s67_s11  ;;  %v33_v6 = vld [vmem:[#allocation0] sm:$0x3]  }
   0xf   :  { %28 = vrot.lane.b32.xlu1 %v27_v4, %s68_s12  ;;  %v39_v7 = vld [vmem:[#allocation0] sm:$0x3]  }
  0x10   :  { %v45_v8 = vld [vmem:[#allocation0] sm:$0x3]  }
  0x12   :  { %34 = vrot.lane.b32.xlu0 %v33_v6, %s69_s13 }
  0x13   :  { %40 = vrot.lane.b32.xlu1 %v39_v7, %s70_s14 }
  0x16   :  { %46 = vrot.lane.b32.xlu0 %v45_v8, %s71_s15 }
  0x7c   :  { %v11_v9 = vpop.permute.xlu0 %10  }
  0x7d   :  { %v23_v10 = vpop.permute.xlu1 %22   ;;  %51 = vst.msk [vmem:[%s118_s1 + $0x1] ss:$8 sm:$0x3] %vm7_vm0, %v11_v9  }
  0x7e   :  { %53 = vst.msk [vmem:[%s118_s1 + $0x3] ss:$8 sm:$0x3] %vm7_vm0, %v23_v10  }
  0x80   :  { %v17_v11 = vpop.permute.xlu0 %16  }
  0x81   :  { %v29_v12 = vpop.permute.xlu1 %28   ;;  %52 = vst.msk [vmem:[%s118_s1 + $0x2] ss:$8 sm:$0x3] %vm7_vm0, %v17_v11  }
  0x82   :  { %54 = vst.msk [vmem:[%s118_s1 + $0x4] ss:$8 sm:$0x3] %vm7_vm0, %v29_v12  }
  0x84   :  { %v35_v13 = vpop.permute.xlu0 %34  }
  0x85   :  { %v41_v14 = vpop.permute.xlu1 %40   ;;  %55 = vst.msk [vmem:[%s118_s1 + $0x5] ss:$8 sm:$0x3] %vm7_vm0, %v35_v13  }
  0x86   :  { %56 = vst.msk [vmem:[%s118_s1 + $0x6] ss:$8 sm:$0x3] %vm7_vm0, %v41_v14  }
  0x88   :  { %v47_v15 = vpop.permute.xlu0 %46  }
  0x89   :  { %57 = vst.msk [vmem:[%s118_s1 + $0x7] ss:$8 sm:$0x3] %vm7_vm0, %v47_v15  }

// kernel: attention_forward.3
= control target key start
LH: loop header
LB: loop body
LE: loop exit
PB: predicated region body
PF: predicated region fallthrough
CT: control target
= control target key end

     0   :  { %vm16_vm0 = vcmask 523264   ;;  %v138_v0 = vmov 0.0   ;;  %vm139_vm1 = vmmov 0   ;;  %vm44_vm2 = vcmask 261120   ;;  %s174_s1 = inlined_call_operand.vmem [shape: bf16[32,64], index: 1, kind: input, shape index: {}]   ;;  %s175_s0 = inlined_call_operand.vmem [shape: bf16[16,32], index: 0, kind: input, shape index: {}]   ;;  %s176_s2 = inlined_call_operand.vmem [shape: bf16[16,64], index: 2, kind: output, shape index: {}]  }
   0x1   :  { %125 = vmatprep.subr.bf16.mxu0 %v138_v0  ;;  %v135_v1 = vld [vmem:[%s174_s1] sm:$0xff]   ;;  %129 = vmatprep.mubr.msk.bf16.mxu0 %vm139_vm1, %v138_v0  ;;  %17 = vst.msk [vmem:[#allocation2] sm:$0xff] %vm16_vm0, %v138_v0  ;;  %18 = vst.msk [vmem:[#allocation2 + $0x8] sm:$0xff] %vm16_vm0, %v138_v0  ;;  %v136_v2 = vld [vmem:[%s174_s1 + $0x8] sm:$0xff]   ;;  %vm107_vm3 = vcmask 519168  }
   0x2   :  { %126 = vmatpush3.bf16.msra.mxu0 %v135_v1  ;;  %v137_v3 = vld [vmem:[%s175_s0] sm:$0xff]  }
   0x3   :  { %127 = vmatprep.subr.bf16.mxu0 %v138_v0 }
   0x6   :  { %128 = vmatpush3.bf16.msra.mxu0 %v136_v2 }
   0x8   :  { %v19_v4 = vld [vmem:[#allocation2] sm:$0xff]  ;;  %v20_v6 = vld [vmem:[#allocation2 + $0x8] sm:$0xff] }
   0x9   :  { %130 = vmatmul.mubr.msk.bf16.vlgmr.msra.gmra.mrb[0].mxu0 %vm44_vm2, %v137_v3 }
  0xdc   :  { %v82_v5 = vpop.f32.mrb[0].mxu0 }
  0xdd   :  { %v89_v7 = vadd.f32 %v82_v5, %v19_v4  ;;  %v131_v8 = vpop.f32.mrb[1].mxu0 }
  0xde   :  { %v85_v9 = vpop.f32.mrb[2].mxu0 }
  0xdf   :  { %92 = vst.msk [vmem:[#allocation2] sm:$0xff] %vm16_vm0, %v89_v7  ;;  %v90_v10 = vadd.f32 %v85_v9, %v20_v6  ;;  %v132_v11 = vpop.f32.mrb[3].mxu0 }
  0xe1   :  { %93 = vst.msk [vmem:[#allocation2 + $0x8] sm:$0xff] %vm16_vm0, %v90_v10 }
  0xe6   :  { %v97_v12 = vld [vmem:[#allocation2] sm:$0xff] }
  0xe7   :  { %v120_v13 = vpack.c.bf16 %v97_v12, %v97_v12 }
  0xe8   :  { %v98_v14 = vld [vmem:[#allocation2 + $0x8] sm:$0xff] }
  0xe9   :  { %108 = vst.msk [vmem:[%s176_s2] sm:$0xf] %vm107_vm3, %v120_v13  ;;  %v121_v15 = vpack.c.bf16 %v98_v14, %v98_v14 }
  0xeb   :  { %109 = vst.msk [vmem:[%s176_s2 + $0x4] sm:$0xf] %vm107_vm3, %v121_v15 }

// kernel: attention_forward.4
= control target key start
LH: loop header
LB: loop body
LE: loop exit
PB: predicated region body
PF: predicated region fallthrough
CT: control target
= control target key end

     0   :  { %s1075_s20 = smov 0   ;;  %s1077_s21 = smov 0   ;;  %s1174_s0 = inlined_call_operand.<no memory space> [shape: s32[1], index: 0, kind: input, shape index: {}]   ;;  %s1175_s1 = inlined_call_operand.vmem [shape: s32[16,1], index: 1, kind: input, shape index: {}]   ;;  %s1176_s2 = inlined_call_operand.vmem [shape: bf16[2,2,16,8], index: 2, kind: input, shape index: {}]   ;;  %s1177_s3 = inlined_call_operand.vmem [shape: bf16[2,2,16,8], index: 3, kind: input, shape index: {}]   ;;  %s1178_s4 = inlined_call_operand.vmem [shape: bf16[2,2,16,8], index: 4, kind: input, shape index: {}]   ;;  %s1179_s5 = inlined_call_operand.vmem [shape: bf16[2,2,16,8], index: 5, kind: output, shape index: {}]  }
   0x1   :  { %10 = sst [smem:[#allocation7]] %s1174_s0  ;;  %s1079_s22 = smov 0  }
   0x2   :  { %s1081_s23 = smov 0   ;;  %s1083_s24 = smov 0  }
   0x3 LB: > { %s38_s0 = sadd.s32 1, %s1026_s22  ;;  %s42_s25 = sadd.s32 1, %s1030_s23  ;;  %s1034_s24 = sphi %s1083_s24, %s16_s24   ;;  %s1030_s23 = sphi %s1081_s23, %s1183_s23   ;;  %s1026_s22 = sphi %s1079_s22, %s1182_s22   ;;  %s1022_s21 = sphi %s1077_s21, %s1181_s21   ;;  %s1018_s20 = sphi %s1075_s20, %s1180_s20  }
   0x4   : > { %p40_p0 = scmp.ge.s32.totalorder %s38_s0, 2  ;;  %p887_p1 = scmp.ge.s32.totalorder %s1034_s24, 1 }
   0x5   : > { %p288_p2 = scmp.lt.s32.totalorder %s1034_s24, 5 }
   0x6   : > { %s1185_s0 = smov (%p40_p0, %s38_s0), 0  ;;  %s1187_s25 = smov (!%p40_p0, %s42_s25), %s1030_s23 }
   0x7   : > { %p289_p3 = pnand %p887_p1, %p288_p2  ;;  %p44_p4 = scmp.ge.s32.totalorder %s1187_s25, 2 }
   0x8   : > { %p374_p5 = scmp.lt.s32.totalorder (!%p289_p3), %s1022_s21, 1  ;;  %p376_p6 = scmp.lt.s32.totalorder (!%p289_p3), %s1018_s20, 1  ;;  %vm457_vm0 = vcmask (!%p289_p3), 64512   ;;  %vm459_vm1 = vcmask (!%p289_p3), 7168   ;;  %v1036_v0 = vmov (!%p289_p3), -2.3819763e+38  }
   0x9   : > { %s1189_s25 = smov (%p44_p4, %s1187_s25), 0  ;;  %292 = sbr.rel (%p289_p3) target bundleno = 913 (0x391), region = 36 }
   0xa   : > { %s1108_s26 = sld [smem:[#allocation7]] (!%p289_p3)  ;;  %460 = vst.msk [vmem:[#allocation2] sm:$0xff] (!%p289_p3), %vm459_vm1, %v1036_v0  ;;  %461 = vst.msk [vmem:[#allocation2 + $0x8] sm:$0xff] (!%p289_p3), %vm459_vm1, %v1036_v0  ;;  %v1037_v1 = vmov (!%p289_p3), 0.0  }
   0xb   : > { %462 = vst.msk [vmem:[#allocation3] sm:$0xff] (!%p289_p3), %vm459_vm1, %v1037_v1  ;;  %463 = vst.msk [vmem:[#allocation3 + $0x8] sm:$0xff] (!%p289_p3), %vm459_vm1, %v1037_v1 }
   0xc   : > { %464 = vst.msk [vmem:[#allocation4] sm:$0xff] (!%p289_p3), %vm457_vm0, %v1037_v1  ;;  %465 = vst.msk [vmem:[#allocation4 + $0x8] sm:$0xff] (!%p289_p3), %vm457_vm0, %v1037_v1 }
  0x10   : > { %s1191_s21 = smov (!%p374_p5, %s1022_s21), 1  ;;  %s1193_s20 = smov (!%p376_p6, %s1018_s20), 1 }
  0x11   : > { %s889_s27 = sshll.u32 %s1191_s21, 2  ;;  %s888_s28 = sshll.u32 %s1193_s20, 1 }
  0x12   : > { %s383_s29 = sadd.s32 %s889_s27, %s888_s28  ;;  %p891_p7 = scmp.gt.s32.totalorder %s1108_s26, 0 }
  0x13   : > { %s890_s30 = sshll.u32 %s383_s29, 2  ;;  %p906_p9 = scmp.lt.s32.totalorder %s1108_s26, 0 }
  0x14   : > { %s385_s8 = scalar_lea.vmem %s1176_s2, %s890_s30  ;;  %s1124_s11 = scalar_lea.vmem %s1179_s5, %s890_s30  ;;  %v1038_v8 = vmov (!%p906_p9), 0.0   ;;  %v532_v9 = vld [vmem:[%s1175_s1] sm:$0xff] (!%p906_p9)  ;;  %vm1039_vm2 = vmmov (!%p906_p9), 0   ;;  %v1040_v11 = vmov (!%p906_p9), 0   ;;  %v533_v12 = vld [vmem:[%s1175_s1 + $0x8] sm:$0xff] (!%p906_p9)  ;;  %v528_v14 = vlaneseq (!%p906_p9)  ;;  %v577_v50 = vld [vmem:[#allocation3] sm:$0xff] (!%p906_p9) }
  0x15   : > { %s389_s12 = scalar_select %p891_p7, 0, %s1108_s26  ;;  %v447_v2 = vld [vmem:[%s385_s8] sm:$0xf]  ;;  %v448_v3 = vld [vmem:[%s385_s8 + $0x4] sm:$0xf] }
  0x16   : > { %v449_v4 = vmul.bf16 1052065461, %v447_v2  ;;  %v450_v5 = vmul.bf16 1052065461, %v448_v3  ;;  %921 = vmatprep.subr.bf16.mxu0 (!%p906_p9), %v1038_v8  ;;  %927 = vmatprep.subr.bf16.mxu1 (!%p906_p9), %v1038_v8  ;;  %v529_v16 = vand.u32 (!%p906_p9), 127, %v528_v14  ;;  %vm546_vm4 = vcmask (!%p906_p9), 130048  }
  0x17   : > { %s892_s13 = sshll.u32 %s389_s12, 1  ;;  %923 = vmatprep.mubr.msk.bf16.mxu0 (!%p906_p9), %vm1039_vm2, %v1038_v8  ;;  %979 = vset.pattern.permute.xlu0 (!%p906_p9), %v1040_v11  ;;  %v544_v26 = vld [vmem:[#allocation2] sm:$0xff] (!%p906_p9)  ;;  %v545_v29 = vld [vmem:[#allocation2 + $0x8] sm:$0xff] (!%p906_p9)  ;;  %v578_v53 = vld [vmem:[#allocation3 + $0x8] sm:$0xff] (!%p906_p9) }
  0x18   : > { %p395_p8 = scmp.lt.s32.totalorder %s892_s13, 1  ;;  %v904_v6 = vcombine.low %v449_v4, %v450_v5  ;;  %470 = sbr.rel (%p906_p9) target bundleno = 764 (0x2fc), region = 44  ;;  %535 = vperm.xlu0 (!%p906_p9), %979, %v532_v9   ;;  %980 = vset.pattern.permute.xlu1 (!%p906_p9), %v1040_v11  ;;  %v592_v58 = vld [vmem:[#allocation4] sm:$0xff] (!%p906_p9)  ;;  %v593_v60 = vld [vmem:[#allocation4 + $0x8] sm:$0xff] (!%p906_p9) }
  0x19   : > { %929 = vmatprep.mubr.msk.bf16.mxu1 (!%p906_p9), %vm1039_vm2, %v1038_v8 }
  0x1a   : > { %s1195_s13 = smov (!%p395_p8, %s892_s13), 1  ;;  %458 = vst.msk [vmem:[#allocation5] sm:$0xff] %vm457_vm0, %v904_v6 }
  0x1b   : > { %s398_s14 = sadd.s32 %s888_s28, %s1195_s13 }
  0x1c   : > { %s400_s15 = sadd.s32 %s889_s27, %s398_s14  ;;  %538 = vperm.xlu0 (!%p906_p9), %979, %v533_v12  }
  0x1d   : > { %s895_s16 = sshll.u32 %s400_s15, 2 }
  0x1e   : > { %s402_s19 = scalar_lea.vmem %s1177_s3, %s895_s16  ;;  %s1134_s29 = scalar_lea.vmem %s1178_s4, %s895_s16 }
  0x1f   : > { %v981_v7 = vld [vmem:[%s402_s19] sm:$0xff]  }
  0x20   : > { %v484_v10 = vsel %vm457_vm0, %v981_v7, 0  ;;  %v982_v34 = vld [vmem:[%s1134_s29] sm:$0xff]  }
  0x21   : > { %922 = vmatpush3.bf16.xpose.msra.mxu0 %v484_v10  ;;  %v471_v13 = vld [vmem:[#allocation5] sm:$0xff]  ;;  %928 = vmatpush3.bf16.msra.mxu1 %v982_v34 }
  0x28   : > { %924 = vmatmul.mubr.msk.bf16.vlgmr.msra.gmra.mrb[0].mxu0 %vm457_vm0, %v471_v13 }
  0x97   : > { %v536_v15 = vpop.permute.xlu0 %535 }
  0x98   : > { %vm540_vm3 = vcmp.le.s32.totalorder %v529_v16, %v536_v15 }
  0x9b   : > { %v539_v17 = vpop.permute.xlu0 %538 }
  0x9c   : > { %vm541_vm5 = vcmp.le.s32.totalorder %v529_v16, %v539_v17 }
  0xfb   : > { %v520_v18 = vpop.f32.mrb[0].mxu0 }
  0xfc   : > { %v542_v19 = vsel %vm540_vm3, %v520_v18, -2.3819763e+38  ;;  %v925_v20 = vpop.f32.mrb[1].mxu0 }
  0xfd   : > { %v523_v21 = vpop.f32.mrb[2].mxu0  ;;  %v547_v22 = vsel %vm546_vm4, %v542_v19, -inf }
  0xfe   : > { %v543_v23 = vsel %vm541_vm5, %v523_v21, -2.3819763e+38  ;;  %548 = vmax.xlane.f32.xlu1 %v547_v22  ;;  %v926_v24 = vpop.f32.mrb[3].mxu0 }
  0xff   : > { %v550_v25 = vsel %vm546_vm4, %v543_v23, -inf }
 0x102   : > { %551 = vmax.xlane.f32.xlu1 %v550_v25 }
 0x18b   : > { %v549_v27 = vpop.xlane.xlu1 %548 }
 0x18c   : > { %v553_v28 = vmax.f32 %v544_v26, %v549_v27 }
 0x18e   : > { %v555_v30 = vsub.f32 %v544_v26, %v553_v28  ;;  %663 = vst.msk [vmem:[#allocation2] sm:$0xff] %vm459_vm1, %v553_v28  ;;  %563 = vperm.xlu0 %979, %v553_v28  }
 0x18f   : > { %v552_v31 = vpop.xlane.xlu1 %551 }
 0x190   : > { %v554_v32 = vmax.f32 %v545_v29, %v552_v31  ;;  %v557_v47 = vmul.f32 1.442695, %v555_v30 }
 0x192   : > { %v556_v33 = vsub.f32 %v545_v29, %v554_v32  ;;  %664 = vst.msk [vmem:[#allocation2 + $0x8] sm:$0xff] %vm459_vm1, %v554_v32  ;;  %568 = vperm.xlu1 %980, %v554_v32  }
 0x194   : > { %v559_v46 = vmul.f32 1.442695, %v556_v33 }
 0x20d   : > { %v564_v35 = vpop.permute.xlu0 %563 }
 0x20e   : > { %v571_v36 = vsub.f32 %v542_v19, %v564_v35 }
 0x210   : > { %v573_v37 = vmul.f32 1.442695, %v571_v36 }
 0x211   : > { %v569_v38 = vpop.permute.xlu1 %568 }
 0x212   : > { %983 = vpow2.f32 %v573_v37  ;;  %v572_v39 = vsub.f32 %v543_v23, %v569_v38 }
 0x214   : > { %v575_v40 = vmul.f32 1.442695, %v572_v39 }
 0x216   : > { %985 = vpow2.f32 %v575_v40 }
 0x217   : > { %987 = vpow2.f32 %v559_v46 }
 0x218   : > { %989 = vpow2.f32 %v557_v47 }
 0x21c   : > { %v984_v41 = vpop.eup %983 }
 0x21d   : > { %v581_v42 = vsel %vm546_vm4, %v984_v41, 0.0 }
 0x21e   : > { %582 = vadd.xlane.f32.xlu0 %v581_v42 }
 0x220   : > { %v986_v43 = vpop.eup %985 }
 0x221   : > { %v584_v44 = vsel %vm546_vm4, %v986_v43, 0.0  ;;  %v606_v45 = vpack.c.bf16 %v986_v43, %v984_v41  ;;  %v988_v48 = vpop.eup %987 }
 0x222   : > { %585 = vadd.xlane.f32.xlu1 %v584_v44  ;;  %v990_v49 = vpop.eup %989  ;;  %v580_v55 = vmul.f32 %v988_v48, %v578_v53 }
 0x223   : > { %930 = vmatmul.mubr.msk.bf16.vlgmr.msra.gmra.mrb[0].mxu1 %vm546_vm4, %v606_v45  ;;  %v579_v51 = vmul.f32 %v990_v49, %v577_v50 }
 0x233   : > { %601 = vperm.xlu1 %980, %v988_v48  }
 0x234   : > { %596 = vperm.xlu0 %979, %v990_v49  }
 0x2ab   : > { %v583_v52 = vpop.xlane.xlu0 %582 }
 0x2ac   : > { %v587_v54 = vadd.f32 %v583_v52, %v579_v51 }
 0x2ae   : > { %590 = vst.msk [vmem:[#allocation3] sm:$0xff] %vm459_vm1, %v587_v54 }
 0x2af   : > { %v586_v56 = vpop.xlane.xlu1 %585 }
 0x2b0   : > { %v588_v57 = vadd.f32 %v586_v56, %v580_v55 }
 0x2b2   : > { %591 = vst.msk [vmem:[#allocation3 + $0x8] sm:$0xff] %vm459_vm1, %v588_v57 }
 0x2b3   : > { %v597_v59 = vpop.permute.xlu0 %596  ;;  %v602_v61 = vpop.permute.xlu1 %601 }
 0x2b4   : > { %v604_v62 = vmul.f32 %v597_v59, %v592_v58  ;;  %v605_v0 = vmul.f32 %v602_v61, %v593_v60 }
 0x2f6   : > { %v652_v63 = vpop.f32.mrb[0].mxu1 }
 0x2f7   : > { %v659_v1 = vadd.f32 %v652_v63, %v604_v62  ;;  %v931_v2 = vpop.f32.mrb[1].mxu1 }
 0x2f8   : > { %v655_v3 = vpop.f32.mrb[2].mxu1 }
 0x2f9   : > { %661 = vst.msk [vmem:[#allocation4] sm:$0xff] %vm457_vm0, %v659_v1  ;;  %v660_v4 = vadd.f32 %v655_v3, %v605_v0  ;;  %v932_v5 = vpop.f32.mrb[3].mxu1 }
 0x2fb   : > { %662 = vst.msk [vmem:[#allocation4 + $0x8] sm:$0xff] %vm457_vm0, %v660_v4 }
 0x2fc PF: > { %v668_v6 = vld [vmem:[#allocation3] sm:$0xff]  ;;  %v669_v7 = vld [vmem:[#allocation3 + $0x8] sm:$0xff]  ;;  %v1041_v8 = vmov 0   ;;  %vm694_vm6 = vcmask 60416  }
 0x2fd   : > { %991 = vset.pattern.permute.xlu0 %v1041_v8  ;;  %992 = vrcp.f32 %v668_v6 }
 0x2fe   : > { %994 = vrcp.f32 %v669_v7 }
 0x300   : > { %v672_v11 = vld [vmem:[#allocation4] sm:$0xff] }
 0x302   : > { %v673_v14 = vld [vmem:[#allocation4 + $0x8] sm:$0xff] }
 0x307   : > { %v993_v9 = vpop.eup %992 }
 0x308   : > { %676 = vperm.xlu0 %991, %v993_v9   ;;  %v995_v10 = vpop.eup %994 }
 0x30c   : > { %681 = vperm.xlu0 %991, %v995_v10  }
 0x387   : > { %v677_v12 = vpop.permute.xlu0 %676 }
 0x388   : > { %v684_v13 = vmul.f32 %v677_v12, %v672_v11 }
 0x38a   : > { %v915_v15 = vpack.c.bf16 %v684_v13, %v684_v13 }
 0x38b   : > { %v682_v16 = vpop.permute.xlu0 %681 }
 0x38c   : > { %695 = vst.msk [vmem:[%s1124_s11] sm:$0xf] %vm694_vm6, %v915_v15  ;;  %v685_v17 = vmul.f32 %v682_v16, %v673_v14 }
 0x38e   : > { %v916_v18 = vpack.c.bf16 %v685_v17, %v685_v17 }
 0x390   : > { %696 = vst.msk [vmem:[%s1124_s11 + $0x4] sm:$0xf] %vm694_vm6, %v916_v18 }
 0x391 PF: > { %s16_s24 = sadd.s32 1, %s1034_s24   ;;  %s1180_s20 = smov %s1026_s22 }
 0x392   : > { %p13_p10 = scmp.ge.s32.totalorder %s16_s24, 6   ;;  %s1181_s21 = smov %s1030_s23 }
 0x393   : > { %s1182_s22 = smov %s1185_s0  ;;  %s1183_s23 = smov %s1189_s25 }
 0x394   :  { %15 = sbr.rel (!%p13_p10) target bundleno = 3 (0x3), region = 87 }

// kernel: attention_forward.5
= control target key start
LH: loop header
LB: loop body
LE: loop exit
PB: predicated region body
PF: predicated region fallthrough
CT: control target
= control target key end

     0   :  { %v177_v1 = vmov 0.0   ;;  %vm178_vm0 = vmmov 0   ;;  %vm17_vm1 = vcmask 261120   ;;  %s223_s0 = inlined_call_operand.vmem [shape: bf16[16,32], index: 0, kind: input, shape index: {}]   ;;  %s224_s1 = inlined_call_operand.vmem [shape: bf16[32,32], index: 1, kind: input, shape index: {}]   ;;  %s225_s2 = inlined_call_operand.hbm [shape: bf16[16,32], index: 2, kind: output, shape index: {}]  }
   0x1   :  { %v150_v0 = vld [vmem:[%s224_s1] sm:$0xff]   ;;  %137 = vmatprep.subr.bf16.mxu0 %v177_v1  ;;  %v151_v2 = vld [vmem:[%s224_s1 + $0x8] sm:$0xff]   ;;  %141 = vmatprep.mubr.msk.bf16.mxu0 %vm178_vm0, %v177_v1  ;;  %18 = vst.msk [vmem:[#allocation2] sm:$0xff] %vm17_vm1, %v177_v1  ;;  %19 = vst.msk [vmem:[#allocation2 + $0x8] sm:$0xff] %vm17_vm1, %v177_v1 }
   0x2   :  { %138 = vmatpush3.bf16.msra.mxu0 %v150_v0 }
   0x3   :  { %139 = vmatprep.subr.bf16.mxu0 %v177_v1 }
   0x4   :  { %7 = vsyncpa [#allocation4], 0  ;;  %v152_v3 = vld [vmem:[%s223_s0] sm:$0xff]   ;;  %s179_s1 = smov [#allocation3]   ;;  %vm107_vm2 = vcmask 257024  }
   0x5   :  { %s115_s15 = sshll.u32 %s179_s1, 4  ;;  %s116_s15 = int_to_ptr.vmem [resolvable:$true] %s115_s15 }
   0x6   :  { %140 = vmatpush3.bf16.msra.mxu0 %v151_v2  ;;  %s153_s0 = scalar_lea.vmem %s116_s15, 128  ;;  %p158_p1 = scmp.lt.s32.totalorder %s116_s15, %s116_s15 }
   0x7   :  { %p154_p0 = scmp.ne.s32.totalorder %s116_s15, %s153_s0  ;;  %p159_p2 = scmp.lt.s32.totalorder %s153_s0, %s153_s0 }
   0x8   :  { %v20_v4 = vld [vmem:[#allocation2] sm:$0xff]  ;;  %v21_v6 = vld [vmem:[#allocation2 + $0x8] sm:$0xff] }
   0x9   :  { %142 = vmatmul.mubr.msk.bf16.vlgmr.msra.gmra.mrb[0].mxu0 %vm17_vm1, %v152_v3  ;;  %p160_p3 = por %p159_p2, %p158_p1 }
   0xb   :  { %p161_p4 = pnand %p160_p3, %p154_p0 }
  0xdc   :  { %v83_v5 = vpop.f32.mrb[0].mxu0 }
  0xdd   :  { %v90_v7 = vadd.f32 %v83_v5, %v20_v4  ;;  %v143_v8 = vpop.f32.mrb[1].mxu0 }
  0xde   :  { %v86_v9 = vpop.f32.mrb[2].mxu0 }
  0xdf   :  { %92 = vst.msk [vmem:[#allocation2] sm:$0xff] %vm17_vm1, %v90_v7  ;;  %v91_v10 = vadd.f32 %v86_v9, %v21_v6  ;;  %v144_v11 = vpop.f32.mrb[3].mxu0 }
  0xe1   :  { %93 = vst.msk [vmem:[#allocation2 + $0x8] sm:$0xff] %vm17_vm1, %v91_v10 }
  0xe6   :  { %v97_v12 = vld [vmem:[#allocation2] sm:$0xff] }
  0xe7   :  { %v132_v13 = vpack.c.bf16 %v97_v12, %v97_v12 }
  0xe8   :  { %v98_v14 = vld [vmem:[#allocation2 + $0x8] sm:$0xff] }
  0xe9   :  { %v133_v15 = vpack.c.bf16 %v98_v14, %v98_v14  ;;  %108 = vst.msk [vmem:[#allocation3] sm:$0xf] %vm107_vm2, %v132_v13 }
  0xeb   :  { %109 = vst.msk [vmem:[#allocation3 + $0x4] sm:$0xf] %vm107_vm2, %v133_v15 }
  0xec   :  { %164 = shalt.err (!%p161_p4)
}
  0xed   :  { %s165_s18 = scalar_lea.hbm %s225_s2, 128 }
  0xee   :  { %p166_p5 = scmp.ne.s32.totalorder %s225_s2, %s165_s18  ;;  %p169_p6 = scmp.lt.u32.totalorder %s165_s18, %s225_s2 }
  0xf0   :  { %p171_p7 = pnand %p169_p6, %p166_p5 }
  0xf2   :  { %174 = shalt.err (!%p171_p7)
}
  0xf3   :  { %s180_s23 = smov 64   ;;  %s181_s24 = smov 4  }
  0xf4   :  { %121 = dma.vmem_to_hbm [thread:$0]  %s116_s15, 128, %s225_s2, [#allocation4], %s180_s23, %s180_s23, %s181_s24  }
  0xf5   :  { %175 = dma.done.wait [#allocation4], 128  }
  0xf6   :  { %176 = vsyncadd [#allocation4], 4294967168 }
  0xf7   :  { %125 = vsyncpa [#allocation4], 1 }

</bundles_post_ra>
